<compile_context>
chip_gen: v7x
topology: tpu7x:2x2x1
jax: 0.10.0
libtpu: 0.0.40
codegen_flags: <defaults>
</compile_context>

<pallas_src>
import functools

import jax
import jax.numpy as jnp
from jax.experimental import pallas as pl
from jax.experimental.pallas import tpu as pltpu


def _ffn_kernel(x_ref, w1_ref, b1_ref, w2_ref, b2_ref, o_ref):
    # x_ref : (TM, E) bf16      w1_ref : (E, H) bf16   b1_ref : (1, H) f32
    # w2_ref: (H, E)  bf16      b2_ref : (1, E) f32    o_ref  : (TM, E) f32
    # First linear: bf16 x bf16 -> f32 accumulate on the MXU.
    h = jnp.dot(x_ref[...], w1_ref[...], preferred_element_type=jnp.float32)
    h = h + b1_ref[...]  # bias added once, on the f32 accumulator

    # GELU (tanh approximation), identical formula to the PyTorch GELU module.
    c = jnp.float32(0.7978845608028654)  # sqrt(2/pi)
    g = 0.5 * h * (1.0 + jnp.tanh(c * (h + 0.044715 * (h * h * h))))

    # Second linear: down-cast GELU output to bf16 for the MXU, f32 accumulate.
    out = jnp.dot(g.astype(jnp.bfloat16), w2_ref[...],
                  preferred_element_type=jnp.float32)
    out = out + b2_ref[...]

    # Dropout -> identity in eval mode.
    o_ref[...] = out.astype(o_ref.dtype)


def _round_up(x, m):
    return (x + m - 1) // m * m


@functools.partial(jax.jit, static_argnames=("tm",))
def feed_forward(x, w1, b1, w2, b2, *, tm=256):
    """x: (B, S, E) float32.  w1: (E, 4E), b1: (4E,), w2: (4E, E), b2: (E,)."""
    B, S, E = x.shape
    H = w1.shape[1]
    M = B * S

    x2d = x.reshape(M, E)

    # Adaptive token tile: never larger than (M rounded up to a sublane multiple),
    # so small inputs run a single unpadded tile; larger inputs use `tm` rows.
    tm_eff = min(tm, _round_up(M, 8))
    m_pad = _round_up(M, tm_eff)
    if m_pad != M:
        x2d = jnp.pad(x2d, ((0, m_pad - M), (0, 0)))

    # bf16 operands for the MXU; biases stay f32 (added to the f32 accumulator).
    x_bf = x2d.astype(jnp.bfloat16)
    w1_bf = w1.astype(jnp.bfloat16)
    w2_bf = w2.astype(jnp.bfloat16)
    b1_2d = b1.reshape(1, H).astype(jnp.float32)
    b2_2d = b2.reshape(1, E).astype(jnp.float32)

    grid = (m_pad // tm_eff,)

    out2d = pl.pallas_call(
        _ffn_kernel,
        out_shape=jax.ShapeDtypeStruct((m_pad, E), x.dtype),
        grid_spec=pltpu.PrefetchScalarGridSpec(
            num_scalar_prefetch=0,
            grid=grid,
            in_specs=[
                pl.BlockSpec((tm_eff, E), lambda i: (i, 0)),  # x tile, streams over M
                pl.BlockSpec((E, H), lambda i: (0, 0)),       # w1 resident in VMEM
                pl.BlockSpec((1, H), lambda i: (0, 0)),       # b1 resident
                pl.BlockSpec((H, E), lambda i: (0, 0)),       # w2 resident
                pl.BlockSpec((1, E), lambda i: (0, 0)),       # b2 resident
            ],
            out_specs=pl.BlockSpec((tm_eff, E), lambda i: (i, 0)),
        ),
        compiler_params=pltpu.CompilerParams(
            # Token tiles are independent -> shard across v7x's 2 TensorCores.
            dimension_semantics=("parallel",),
            # Explicit scoped-VMEM budget (safe across v5e/v6e/v7x for these
            # resident-weight sizes; covers double-buffered x/out tiles).
            vmem_limit_bytes=32 * 1024 * 1024,
        ),
    )(x_bf, w1_bf, b1_2d, w2_bf, b2_2d)

    if m_pad != M:
        out2d = out2d[:M]
    return out2d.reshape(B, S, E)


if __name__ == "__main__":
    # Config: emb_dim=32 -> hidden=128, drop_rate irrelevant at eval time.
    B, S, E = 2, 8, 32
    H = 4 * E

    key = jax.random.PRNGKey(0)
    kx, kw1, kb1, kw2, kb2 = jax.random.split(key, 5)

    x = jax.random.normal(kx, (B, S, E), dtype=jnp.float32)
    # Deterministic "Kaiming-ish" small init (nn.Linear weights, transposed to (in, out)).
    w1 = jax.random.normal(kw1, (E, H), dtype=jnp.float32) * (1.0 / jnp.sqrt(E))
    b1 = jax.random.normal(kb1, (H,), dtype=jnp.float32) * 0.01
    w2 = jax.random.normal(kw2, (H, E), dtype=jnp.float32) * (1.0 / jnp.sqrt(H))
    b2 = jax.random.normal(kb2, (E,), dtype=jnp.float32) * 0.01

    out = feed_forward(x, w1, b1, w2, b2)
    jax.block_until_ready(out)

    # Pure-JAX f32 reference (kernel uses bf16 matmul operands -> loosened tolerance).
    def ref(x):
        h = x @ w1 + b1
        g = 0.5 * h * (1.0 + jnp.tanh(jnp.sqrt(2.0 / jnp.pi) * (h + 0.044715 * h ** 3)))
        return g @ w2 + b2

    expected = ref(x)
    assert out.shape == (B, S, E)
    assert jnp.allclose(out, expected, atol=2e-2, rtol=2e-2), (
        float(jnp.max(jnp.abs(out - expected))))

    print("KERNEL_OK")
</pallas_src>

<mosaic_0001>
module attributes {stable_mosaic.version = 11 : i64} {
  func.func @_ffn_kernel(%arg0: i32, %arg1: memref<16x32xbf16, #tpu.memory_space<vmem>>, %arg2: memref<32x128xbf16, #tpu.memory_space<vmem>>, %arg3: memref<1x128xf32, #tpu.memory_space<vmem>>, %arg4: memref<128x32xbf16, #tpu.memory_space<vmem>>, %arg5: memref<1x32xf32, #tpu.memory_space<vmem>>, %arg6: memref<16x32xf32, #tpu.memory_space<vmem>>) attributes {dimension_semantics = [#tpu.dimension_semantics<parallel>], iteration_bounds = array<i64: 1>, scalar_prefetch = 0 : i64, scratch_operands = 0 : i64, tpu.core_type = #tpu.core_type<tc>, window_params = [{transform_indices = @transform_0, window_bounds = array<i64: 16, 32>}, {pipeline_mode = #tpu.pipeline_mode<synchronous>, transform_indices = @transform_1, window_bounds = array<i64: 32, 128>}, {pipeline_mode = #tpu.pipeline_mode<synchronous>, transform_indices = @transform_2, window_bounds = array<i64: 1, 128>}, {pipeline_mode = #tpu.pipeline_mode<synchronous>, transform_indices = @transform_3, window_bounds = array<i64: 128, 32>}, {pipeline_mode = #tpu.pipeline_mode<synchronous>, transform_indices = @transform_4, window_bounds = array<i64: 1, 32>}, {transform_indices = @transform_5, window_bounds = array<i64: 16, 32>}]} {
    %c0 = arith.constant 0 : index
    %c0_0 = arith.constant 0 : index
    %0 = vector.load %arg1[%c0, %c0_0] : memref<16x32xbf16, #tpu.memory_space<vmem>>, vector<16x32xbf16>
    %c0_1 = arith.constant 0 : index
    %c0_2 = arith.constant 0 : index
    %1 = vector.load %arg2[%c0_1, %c0_2] : memref<32x128xbf16, #tpu.memory_space<vmem>>, vector<32x128xbf16>
    %cst = arith.constant dense<0.000000e+00> : vector<16x128xf32>
    %2 = tpu.matmul %0, %1, %cst {dimension_numbers = #tpu.dot_dimension_numbers<[1], [0], [0], [1], [0, 0, 1, 1], [], []>} : vector<16x32xbf16>, vector<32x128xbf16>, vector<16x128xf32> -> vector<16x128xf32>
    %c0_3 = arith.constant 0 : index
    %c0_4 = arith.constant 0 : index
    %3 = vector.load %arg3[%c0_3, %c0_4] : memref<1x128xf32, #tpu.memory_space<vmem>>, vector<1x128xf32>
    %4 = vector.broadcast %3 : vector<1x128xf32> to vector<16x128xf32>
    %5 = arith.addf %2, %4 : vector<16x128xf32>
    %cst_5 = arith.constant 5.000000e-01 : f32
    %6 = vector.broadcast %cst_5 : f32 to vector<16x128xf32>
    %7 = arith.mulf %6, %5 : vector<16x128xf32>
    %8 = arith.mulf %5, %5 : vector<16x128xf32>
    %9 = arith.mulf %8, %5 : vector<16x128xf32>
    %cst_6 = arith.constant 4.471500e-02 : f32
    %10 = vector.broadcast %cst_6 : f32 to vector<16x128xf32>
    %11 = arith.mulf %10, %9 : vector<16x128xf32>
    %12 = arith.addf %5, %11 : vector<16x128xf32>
    %cst_7 = arith.constant 0.797884583 : f32
    %13 = vector.broadcast %cst_7 : f32 to vector<16x128xf32>
    %14 = arith.mulf %13, %12 : vector<16x128xf32>
    %15 = math.tanh %14 : vector<16x128xf32>
    %cst_8 = arith.constant 1.000000e+00 : f32
    %16 = vector.broadcast %cst_8 : f32 to vector<16x128xf32>
    %17 = arith.addf %16, %15 : vector<16x128xf32>
    %18 = arith.mulf %7, %17 : vector<16x128xf32>
    %19 = arith.truncf %18 : vector<16x128xf32> to vector<16x128xbf16>
    %c0_9 = arith.constant 0 : index
    %c0_10 = arith.constant 0 : index
    %20 = vector.load %arg4[%c0_9, %c0_10] : memref<128x32xbf16, #tpu.memory_space<vmem>>, vector<128x32xbf16>
    %cst_11 = arith.constant dense<0.000000e+00> : vector<16x32xf32>
    %21 = tpu.matmul %19, %20, %cst_11 {dimension_numbers = #tpu.dot_dimension_numbers<[1], [0], [0], [1], [0, 0, 1, 1], [], []>} : vector<16x128xbf16>, vector<128x32xbf16>, vector<16x32xf32> -> vector<16x32xf32>
    %c0_12 = arith.constant 0 : index
    %c0_13 = arith.constant 0 : index
    %22 = vector.load %arg5[%c0_12, %c0_13] : memref<1x32xf32, #tpu.memory_space<vmem>>, vector<1x32xf32>
    %23 = vector.broadcast %22 : vector<1x32xf32> to vector<16x32xf32>
    %24 = arith.addf %21, %23 : vector<16x32xf32>
    %c0_14 = arith.constant 0 : index
    %c0_15 = arith.constant 0 : index
    %25 = vector.load %arg6[%c0_14, %c0_15] : memref<16x32xf32, #tpu.memory_space<vmem>>, vector<16x32xf32>
    tpu.vector_store %arg6[%c0_14, %c0_15], %24 {strides = array<i32>} : memref<16x32xf32, #tpu.memory_space<vmem>>, vector<16x32xf32>,
    return
  }
  func.func @transform_0(%arg0: i32) -> (i32, i32) {
    %c0_i32 = arith.constant 0 : i32
    %c0_i32_0 = arith.constant 0 : i32
    return %arg0, %c0_i32 : i32, i32
  }
  func.func @transform_1(%arg0: i32) -> (i32, i32) {
    %c0_i32 = arith.constant 0 : i32
    %c0_i32_0 = arith.constant 0 : i32
    %c0_i32_1 = arith.constant 0 : i32
    return %c0_i32, %c0_i32_0 : i32, i32
  }
  func.func @transform_2(%arg0: i32) -> (i32, i32) {
    %c0_i32 = arith.constant 0 : i32
    %c0_i32_0 = arith.constant 0 : i32
    %c0_i32_1 = arith.constant 0 : i32
    return %c0_i32, %c0_i32_0 : i32, i32
  }
  func.func @transform_3(%arg0: i32) -> (i32, i32) {
    %c0_i32 = arith.constant 0 : i32
    %c0_i32_0 = arith.constant 0 : i32
    %c0_i32_1 = arith.constant 0 : i32
    return %c0_i32, %c0_i32_0 : i32, i32
  }
  func.func @transform_4(%arg0: i32) -> (i32, i32) {
    %c0_i32 = arith.constant 0 : i32
    %c0_i32_0 = arith.constant 0 : i32
    %c0_i32_1 = arith.constant 0 : i32
    return %c0_i32, %c0_i32_0 : i32, i32
  }
  func.func @transform_5(%arg0: i32) -> (i32, i32) {
    %c0_i32 = arith.constant 0 : i32
    %c0_i32_0 = arith.constant 0 : i32
    return %arg0, %c0_i32 : i32, i32
  }
}

</mosaic_0001>

<bundles_post_ra>
// kernel: feed_forward.1
= control target key start
LH: loop header
LB: loop body
LE: loop exit
PB: predicated region body
PF: predicated region fallthrough
CT: control target
= control target key end

     0   :  { %v344_v1 = vmov 0.0   ;;  %vm345_vm0 = vmmov 0   ;;  %vm52_vm1 = vcmask 261120   ;;  %s433_s0 = inlined_call_operand.vmem [shape: bf16[16,32], index: 0, kind: input, shape index: {}]   ;;  %s434_s1 = inlined_call_operand.vmem [shape: bf16[32,128], index: 1, kind: input, shape index: {}]   ;;  %s435_s2 = inlined_call_operand.vmem [shape: f32[1,128], index: 2, kind: input, shape index: {}]   ;;  %s436_s3 = inlined_call_operand.vmem [shape: bf16[128,32], index: 3, kind: input, shape index: {}]   ;;  %s437_s4 = inlined_call_operand.vmem [shape: f32[1,32], index: 4, kind: input, shape index: {}]   ;;  %s438_s5 = inlined_call_operand.hbm [shape: f32[16,32], index: 5, kind: output, shape index: {}]  }
   0x1   :  { %v305_v0 = vld [vmem:[%s434_s1] sm:$0xff]   ;;  %272 = vmatprep.subr.bf16.mxu0 %v344_v1  ;;  %280 = vmatprep.subr.bf16.mxu1 %v344_v1  ;;  %v306_v2 = vld [vmem:[%s434_s1 + $0x8] sm:$0xff]  }
   0x2   :  { %273 = vmatpush3.bf16.msra.mxu0 %v305_v0  ;;  %276 = vmatprep.mubr.msk.bf16.mxu0 %vm345_vm0, %v344_v1  ;;  %v307_v3 = vld [vmem:[%s433_s0] sm:$0xff]  }
   0x3   :  { %274 = vmatprep.subr.bf16.mxu0 %v344_v1  ;;  %296 = vmatprep.mubr.msk.bf16.mxu1 %vm345_vm0, %v344_v1 }
   0x6   :  { %275 = vmatpush3.bf16.msra.mxu0 %v306_v2 }
   0x7   :  { %10 = vsyncpa [#allocation3], 0  ;;  %v308_v4 = vld [vmem:[%s436_s3] sm:$0xff]   ;;  %v309_v5 = vld [vmem:[%s436_s3 + $0x8] sm:$0xff]   ;;  %s346_s15 = smov [#allocation2]  }
   0x8   :  { %281 = vmatpush3.bf16.msra.mxu1 %v308_v4  ;;  %v310_v6 = vld [vmem:[%s436_s3 + $0x10] sm:$0xff]   ;;  %v311_v7 = vld [vmem:[%s436_s3 + $0x18] sm:$0xff]   ;;  %v312_v8 = vld [vmem:[%s436_s3 + $0x20] sm:$0xff]   ;;  %s235_s16 = sshll.u32 %s346_s15, 4  ;;  %s236_s16 = int_to_ptr.vmem [resolvable:$true] %s235_s16 }
   0x9   :  { %277 = vmatmul.mubr.msk.bf16.vlgmr.msra.gmra.mrb[0].mxu0 %vm52_vm1, %v307_v3  ;;  %282 = vmatprep.subr.bf16.mxu1 %v344_v1  ;;  %v313_v9 = vld [vmem:[%s436_s3 + $0x28] sm:$0xff]   ;;  %v314_v10 = vld [vmem:[%s436_s3 + $0x30] sm:$0xff]   ;;  %v315_v11 = vld [vmem:[%s436_s3 + $0x38] sm:$0xff]   ;;  %s320_s17 = scalar_lea.vmem %s236_s16, 256  ;;  %p325_p1 = scmp.lt.s32.totalorder %s236_s16, %s236_s16 }
   0xa   :  { %v246_v12 = vld [vmem:[%s435_s2] ss:$0 sm:$0xff]  ;;  %p321_p0 = scmp.ne.s32.totalorder %s236_s16, %s320_s17  ;;  %p326_p2 = scmp.lt.s32.totalorder %s320_s17, %s320_s17 }
   0xb   :  { %v251_v38 = vld [vmem:[%s437_s4] ss:$0 sm:$0xff] }
   0xc   :  { %283 = vmatpush3.bf16.msra.mxu1 %v309_v5  ;;  %p327_p3 = por %p326_p2, %p325_p1 }
   0xd   :  { %284 = vmatprep.subr.bf16.mxu1 %v344_v1 }
   0xe   :  { %p328_p4 = pnand %p327_p3, %p321_p0 }
  0x10   :  { %285 = vmatpush3.bf16.msra.mxu1 %v310_v6 }
  0x11   :  { %286 = vmatprep.subr.bf16.mxu1 %v344_v1 }
  0x14   :  { %287 = vmatpush3.bf16.msra.mxu1 %v311_v7 }
  0x15   :  { %288 = vmatprep.subr.bf16.mxu1 %v344_v1 }
  0x18   :  { %289 = vmatpush3.bf16.msra.mxu1 %v312_v8 }
  0x19   :  { %290 = vmatprep.subr.bf16.mxu1 %v344_v1 }
  0x1c   :  { %291 = vmatpush3.bf16.msra.mxu1 %v313_v9 }
  0x1d   :  { %292 = vmatprep.subr.bf16.mxu1 %v344_v1 }
  0x20   :  { %293 = vmatpush3.bf16.msra.mxu1 %v314_v10 }
  0x21   :  { %294 = vmatprep.subr.bf16.mxu1 %v344_v1 }
  0x24   :  { %295 = vmatpush3.bf16.msra.mxu1 %v315_v11 }
  0xdc   :  { %v90_v13 = vpop.f32.mrb[0].mxu0 }
  0xdd   :  { %v91_v14 = vadd.f32 %v246_v12, %v90_v13  ;;  %v278_v15 = vpop.f32.mrb[1].mxu0 }
  0xde   :  { %v93_v16 = vpop.f32.mrb[2].mxu0 }
  0xdf   :  { %v99_v17 = vmul.f32 %v91_v14, %v91_v14  ;;  %v94_v18 = vadd.f32 %v246_v12, %v93_v16  ;;  %v279_v19 = vpop.f32.mrb[3].mxu0  ;;  %v97_v32 = vmul.f32 0.5, %v91_v14 }
  0xe1   :  { %v101_v20 = vmul.f32 %v99_v17, %v91_v14  ;;  %v100_v21 = vmul.f32 %v94_v18, %v94_v18  ;;  %v98_v33 = vmul.f32 0.5, %v94_v18 }
  0xe3   :  { %v103_v22 = vmul.f32 0.044715, %v101_v20  ;;  %v102_v23 = vmul.f32 %v100_v21, %v94_v18 }
  0xe5   :  { %v105_v24 = vadd.f32 %v103_v22, %v91_v14  ;;  %v104_v25 = vmul.f32 0.044715, %v102_v23 }
  0xe7   :  { %v107_v26 = vmul.f32 0.7978846, %v105_v24  ;;  %v106_v27 = vadd.f32 %v104_v25, %v94_v18 }
  0xe9   :  { %316 = vtanh.f32 %v107_v26  ;;  %v108_v28 = vmul.f32 0.7978846, %v106_v27 }
  0xeb   :  { %318 = vtanh.f32 %v108_v28 }
  0xf3   :  { %v317_v29 = vpop.eup %316 }
  0xf4   :  { %v111_v30 = vadd.f32 1.0, %v317_v29 }
  0xf5   :  { %v319_v31 = vpop.eup %318 }
  0xf6   :  { %v112_v34 = vadd.f32 1.0, %v319_v31  ;;  %v113_v35 = vmul.f32 %v111_v30, %v97_v32 }
  0xf8   :  { %v114_v36 = vmul.f32 %v112_v34, %v98_v33 }
  0xfa   :  { %v115_v37 = vpack.c.bf16 %v114_v36, %v113_v35 }
  0xfc   :  { %297 = vmatmul.mubr.bf16.vlgmr.msra.gmra.mrb[0].mxu1 %v115_v37 }
 0x1cf   :  { %v221_v39 = vpop.f32.mrb[0].mxu1 }
 0x1d0   :  { %v222_v40 = vadd.f32 %v251_v38, %v221_v39  ;;  %v298_v41 = vpop.f32.mrb[1].mxu1 }
 0x1d1   :  { %v224_v42 = vpop.f32.mrb[2].mxu1 }
 0x1d2   :  { %228 = vst.msk [vmem:[#allocation2] sm:$0xff] %vm52_vm1, %v222_v40  ;;  %v225_v43 = vadd.f32 %v251_v38, %v224_v42  ;;  %v299_v44 = vpop.f32.mrb[3].mxu1 }
 0x1d4   :  { %229 = vst.msk [vmem:[#allocation2 + $0x8] sm:$0xff] %vm52_vm1, %v225_v43 }
 0x1d5   :  { %331 = shalt.err (!%p328_p4)
}
 0x1d6   :  { %s332_s19 = scalar_lea.hbm %s438_s5, 256 }
 0x1d7   :  { %p333_p5 = scmp.ne.s32.totalorder %s438_s5, %s332_s19  ;;  %p336_p6 = scmp.lt.u32.totalorder %s332_s19, %s438_s5 }
 0x1d9   :  { %p338_p7 = pnand %p336_p6, %p333_p5 }
 0x1db   :  { %341 = shalt.err (!%p338_p7)
}
 0x1dc   :  { %s347_s24 = smov 128   ;;  %s348_s25 = smov 8  }
 0x1dd   :  { %241 = dma.vmem_to_hbm [thread:$0]  %s236_s16, 256, %s438_s5, [#allocation3], %s347_s24, %s347_s24, %s348_s25  }
 0x1de   :  { %342 = dma.done.wait [#allocation3], 256  }
 0x1df   :  { %343 = vsyncadd [#allocation3], 4294967040 }
 0x1e0   :  { %245 = vsyncpa [#allocation3], 1 }

</bundles_post_ra>
